<compile_context>
chip_gen: v5e
topology: v5e:2x2
jax: 0.10.0
libtpu: 0.0.40
codegen_flags: <defaults>
</compile_context>

<pallas_src>
import jax
import jax.numpy as jnp
from jax.experimental import pallas as pl
from jax.experimental.pallas import tpu as pltpu

_LANES = 128
# Per-array block byte budget (see header).  2 MiB/array keeps total in-flight
# VMEM (6 double-buffered tiles) at 12 MiB -> safe on v5e/v6e/v7x defaults.
_BLOCK_BYTES = 2 * 1024 * 1024


def _relu_kernel(x_ref, y_ref, mask_ref):
    x = x_ref[...]
    # mask = (x > 0): 0 at x == 0 and for NaN inputs.
    # y = x * mask keeps NaN * 0 = NaN, matching the PyTorch module exactly.
    mask = (x > 0).astype(x.dtype)
    y_ref[...] = x * mask
    mask_ref[...] = mask


def _round_up(a, m):
    return ((a + m - 1) // m) * m


def _call(x2d, block_shape, grid):
    rows, cols = x2d.shape
    n = rows * cols
    itemsize = jnp.dtype(x2d.dtype).itemsize
    return pl.pallas_call(
        _relu_kernel,
        out_shape=(
            jax.ShapeDtypeStruct((rows, cols), x2d.dtype),
            jax.ShapeDtypeStruct((rows, cols), x2d.dtype),
        ),
        grid_spec=pltpu.PrefetchScalarGridSpec(
            num_scalar_prefetch=0,
            grid=grid,
            in_specs=[pl.BlockSpec(block_shape, lambda i: (i, 0))],
            out_specs=[
                pl.BlockSpec(block_shape, lambda i: (i, 0)),
                pl.BlockSpec(block_shape, lambda i: (i, 0)),
            ],
        ),
        compiler_params=pltpu.CompilerParams(
            dimension_semantics=("parallel",),
        ),
        cost_estimate=pl.CostEstimate(
            flops=2 * n, transcendentals=0, bytes_accessed=3 * n * itemsize
        ),
    )(x2d)


def _relu_2d(x2d):
    """Tiled kernel over a (rows, 128) lane-dense slab."""
    rows, cols = x2d.shape
    itemsize = jnp.dtype(x2d.dtype).itemsize
    # sublane packing granularity: 8 (32-bit) / 16 (bf16) / 32 (int8)
    pack = {4: 8, 2: 16, 1: 32}.get(itemsize, 8)
    cap_rows = max(pack, (_BLOCK_BYTES // (cols * itemsize)) // pack * pack)

    if rows > cap_rows:
        block_rows = cap_rows                      # ~2 MiB blocks, grid >= 2
    elif rows > cap_rows // 2 and rows >= 2 * pack:
        # keep >= 2 parallel grid steps so v7x's two TensorCores both engage
        block_rows = _round_up(pl.cdiv(rows, 2), pack)
    else:
        block_rows = rows                          # single full-dims block

    grid = (pl.cdiv(rows, block_rows),)
    return _call(x2d, (block_rows, cols), grid)


def relu_pallas(x):
    """Returns (x * mask, mask) with mask = (x > 0).astype(x.dtype)."""
    orig_shape = x.shape
    n = x.size
    itemsize = jnp.dtype(x.dtype).itemsize

    if n % _LANES == 0:
        x2d = x.reshape(n // _LANES, _LANES)
        y2d, m2d = _relu_2d(x2d)
        return y2d.reshape(orig_shape), m2d.reshape(orig_shape)

    flat = x.reshape(-1)
    if n * itemsize <= _BLOCK_BYTES:
        # small ragged array: one full-dims block, no padding / extra copies
        y2d, m2d = _call(flat.reshape(1, n), (1, n), (1,))
        return y2d.reshape(orig_shape), m2d.reshape(orig_shape)

    # large ragged array: kernel on the 128-aligned prefix, tiny jnp tail
    n_main = (n // _LANES) * _LANES
    y_main, m_main = _relu_2d(flat[:n_main].reshape(n_main // _LANES, _LANES))
    tail = flat[n_main:]
    m_tail = (tail > 0).astype(x.dtype)
    y_tail = tail * m_tail
    y = jnp.concatenate([y_main.reshape(-1), y_tail]).reshape(orig_shape)
    m = jnp.concatenate([m_main.reshape(-1), m_tail]).reshape(orig_shape)
    return y, m


if __name__ == "__main__":
    key = jax.random.PRNGKey(0)
    # NCHW input, small shapes: batch=2, channels=4, spatial=16x16
    x = jax.random.normal(key, (2, 4, 16, 16), dtype=jnp.float32)

    y, mask = relu_pallas(x)
    jax.block_until_ready((y, mask))

    # reference check (pure JAX)
    mask_ref = (x > 0).astype(x.dtype)
    y_ref = x * mask_ref
    assert y.shape == x.shape and mask.shape == x.shape
    assert y.dtype == x.dtype and mask.dtype == x.dtype
    assert jnp.array_equal(y, y_ref)
    assert jnp.array_equal(mask, mask_ref)

    # also exercise the ragged (n % 128 != 0) path
    x_odd = jax.random.normal(key, (3, 5, 7), dtype=jnp.float32)
    y_o, m_o = relu_pallas(x_odd)
    jax.block_until_ready((y_o, m_o))
    m_o_ref = (x_odd > 0).astype(x_odd.dtype)
    assert jnp.array_equal(y_o, x_odd * m_o_ref)
    assert jnp.array_equal(m_o, m_o_ref)

    print("KERNEL_OK")
</pallas_src>

<mosaic_0001>
module attributes {stable_mosaic.version = 11 : i64} {
  func.func @_relu_kernel(%arg0: i32, %arg1: memref<16x128xf32, #tpu.memory_space<vmem>>, %arg2: memref<16x128xf32, #tpu.memory_space<vmem>>, %arg3: memref<16x128xf32, #tpu.memory_space<vmem>>) attributes {dimension_semantics = [#tpu.dimension_semantics<parallel>], iteration_bounds = array<i64: 1>, scalar_prefetch = 0 : i64, scratch_operands = 0 : i64, tpu.core_type = #tpu.core_type<tc>, window_params = [{transform_indices = @transform_0, window_bounds = array<i64: 16, 128>}, {transform_indices = @transform_1, window_bounds = array<i64: 16, 128>}, {transform_indices = @transform_2, window_bounds = array<i64: 16, 128>}]} {
    %c0 = arith.constant 0 : index
    %c0_0 = arith.constant 0 : index
    %0 = vector.load %arg1[%c0, %c0_0] : memref<16x128xf32, #tpu.memory_space<vmem>>, vector<16x128xf32>
    %cst = arith.constant 0.000000e+00 : f32
    %1 = vector.broadcast %cst : f32 to vector<16x128xf32>
    %2 = arith.cmpf ogt, %0, %1 : vector<16x128xf32>
    %3 = arith.extui %2 : vector<16x128xi1> to vector<16x128xi32>
    %4 = arith.sitofp %3 : vector<16x128xi32> to vector<16x128xf32>
    %5 = arith.mulf %0, %4 : vector<16x128xf32>
    %c0_1 = arith.constant 0 : index
    %c0_2 = arith.constant 0 : index
    %6 = vector.load %arg2[%c0_1, %c0_2] : memref<16x128xf32, #tpu.memory_space<vmem>>, vector<16x128xf32>
    tpu.vector_store %arg2[%c0_1, %c0_2], %5 {strides = array<i32>} : memref<16x128xf32, #tpu.memory_space<vmem>>, vector<16x128xf32>,
    %c0_3 = arith.constant 0 : index
    %c0_4 = arith.constant 0 : index
    %7 = vector.load %arg3[%c0_3, %c0_4] : memref<16x128xf32, #tpu.memory_space<vmem>>, vector<16x128xf32>
    tpu.vector_store %arg3[%c0_3, %c0_4], %4 {strides = array<i32>} : memref<16x128xf32, #tpu.memory_space<vmem>>, vector<16x128xf32>,
    return
  }
  func.func @transform_0(%arg0: i32) -> (i32, i32) {
    %c0_i32 = arith.constant 0 : i32
    %c0_i32_0 = arith.constant 0 : i32
    return %arg0, %c0_i32 : i32, i32
  }
  func.func @transform_1(%arg0: i32) -> (i32, i32) {
    %c0_i32 = arith.constant 0 : i32
    %c0_i32_0 = arith.constant 0 : i32
    return %arg0, %c0_i32 : i32, i32
  }
  func.func @transform_2(%arg0: i32) -> (i32, i32) {
    %c0_i32 = arith.constant 0 : i32
    %c0_i32_0 = arith.constant 0 : i32
    return %arg0, %c0_i32 : i32, i32
  }
}

</mosaic_0001>

<bundles_post_ra>
// kernel: tpu_custom_call.1
= control target key start
LH: loop header
LB: loop body
LE: loop exit
PB: predicated region body
PF: predicated region fallthrough
CT: control target
= control target key end

     0   :  { %8 = vsyncpa [#allocation3], 0  ;;  %s204_s0 = inlined_call_operand.hbm [shape: f32[16,128], index: 0, kind: input, shape index: {}]   ;;  %s205_s1 = inlined_call_operand.hbm [shape: f32[16,128], index: 1, kind: output, shape index: {0}]   ;;  %s206_s2 = inlined_call_operand.hbm [shape: f32[16,128], index: 2, kind: output, shape index: {1}]  }
   0x1   :  { %9 = vsyncpa [#allocation4], 0 }
   0x2   :  { %10 = vsyncpa [#allocation7], 0  ;;  %s15_s11 = sshll.u32 %s204_s0, 4  ;;  %s165_s12 = smov [#allocation2]   ;;  %s16_s11 = int_to_ptr.hbm [resolvable:$true] %s15_s11 }
   0x3   :  { %s17_s13 = sshll.u32 %s165_s12, 4  ;;  %s166_s14 = smov 128   ;;  %s18_s13 = int_to_ptr.vmem [resolvable:$true] %s17_s13 }
   0x4   :  { %s167_s15 = smov 8  }
   0x5   :  { %23 = dma.hbm_to_vmem [thread:$0]  %s16_s11, 256, %s18_s13, [#allocation3], %s166_s14, %s166_s14, %s167_s15  }
   0x6   :  { %159 = dma.done.wait [#allocation3], 256  }
   0x7   :  { %160 = vsyncadd [#allocation3], 4294967040  ;;  %s168_s16 = smov [#allocation6]   ;;  %s61_s20 = sshll.u32 %s206_s2, 4  ;;  %v28_v0 = vld [vmem:[#allocation2] sm:$0xff]  ;;  %v29_v1 = vld [vmem:[#allocation2 + $0x8] sm:$0xff]  ;;  %s62_s20 = int_to_ptr.hbm [resolvable:$true] %s61_s20 }
   0x8   :  { %s59_s17 = sshll.u32 %s168_s16, 4  ;;  %vm30_vm0 = vcmp.gt.f32.partialorder %v28_v0, 0.0  ;;  %vm31_vm1 = vcmp.gt.f32.partialorder %v29_v1, 0.0  ;;  %s169_s0 = smov [#allocation5]   ;;  %v170_v2 = vmov 0.0   ;;  %s60_s17 = int_to_ptr.vmem [resolvable:$true] %s59_s17 }
   0x9   :  { %s46_s21 = sshll.u32 %s169_s0, 4  ;;  %s48_s24 = sshll.u32 %s205_s1, 4  ;;  %v79_v3 = vsel %vm30_vm0, 1.0, %v170_v2  ;;  %v80_v4 = vsel %vm31_vm1, 1.0, %v170_v2  ;;  %s47_s21 = int_to_ptr.vmem [resolvable:$true] %s46_s21  ;;  %s49_s24 = int_to_ptr.hbm [resolvable:$true] %s48_s24 }
   0xa   :  { %v36_v5 = vmul.f32 %v79_v3, %v28_v0  ;;  %40 = vst [vmem:[#allocation6] sm:$0xff] %v79_v3  ;;  %v37_v6 = vmul.f32 %v80_v4, %v29_v1 }
   0xb   :  { %41 = vst [vmem:[#allocation6 + $0x8] sm:$0xff] %v80_v4 }
   0xc   :  { %38 = vst [vmem:[#allocation5] sm:$0xff] %v36_v5  ;;  %67 = dma.vmem_to_hbm [thread:$0]  %s60_s17, 256, %s62_s20, [#allocation7], %s166_s14, %s166_s14, %s167_s15  }
   0xd   :  { %39 = vst [vmem:[#allocation5 + $0x8] sm:$0xff] %v37_v6 }
   0xe   :  { %54 = dma.vmem_to_hbm [thread:$0]  %s47_s21, 256, %s49_s24, [#allocation4], %s166_s14, %s166_s14, %s167_s15  }
   0xf   :  { %161 = dma.done.wait [#allocation4], 256  }
  0x10   :  { %162 = vsyncadd [#allocation4], 4294967040 }
  0x11   :  { %163 = dma.done.wait [#allocation7], 256  }
  0x12   :  { %164 = vsyncadd [#allocation7], 4294967040 }
  0x13   :  { %76 = vsyncpa [#allocation3], 1 }
  0x14   :  { %77 = vsyncpa [#allocation4], 1 }
  0x15   :  { %78 = vsyncpa [#allocation7], 1 }

</bundles_post_ra>
